<compile_context>
chip_gen: v6e
topology: v6e:2x2x1
jax: 0.10.0
libtpu: 0.0.40
codegen_flags: <defaults>
</compile_context>

<pallas_src>
import jax
import jax.numpy as jnp
from jax import lax
from jax.experimental import pallas as pl
from jax.experimental.pallas import tpu as pltpu

INP = 5          # 4 state dims + 1 prev action
HIDDEN = 32
NACT = 3         # Acrobot-v1 action space
NACT_PAD = 128   # lane-dense output head (softmax over 128 lanes, pads masked out)


def _lstm_agent_kernel(x_ref, h0_ref, c0_ref,
                       w1_ref, wih_ref, whh_ref, bias_ref,
                       w3_ref, b3_ref,
                       out_ref, hout_ref, cout_ref,
                       gx_ref, hs_ref):
    f32 = jnp.float32
    H = HIDDEN
    Bp = h0_ref.shape[0]
    T = x_ref.shape[0] // Bp

    # ---- Phase 1: x-side path for ALL timesteps, one lane-dense MXU pass ----
    # x carries a ones-column, so w1_ref already includes the layer1 bias row.
    ft = jnp.maximum(
        jnp.dot(x_ref[...], w1_ref[...], preferred_element_type=f32), 0.0)    # (T*Bp, H)
    gx_ref[...] = (jnp.dot(ft, wih_ref[...], preferred_element_type=f32)
                   + bias_ref[...])                                            # (T*Bp, 4H)

    # Hoisted lane mask: tanh on the g-gate lanes [2H, 3H), sigmoid elsewhere.
    lane = lax.broadcasted_iota(jnp.int32, (Bp, 4 * H), 1)
    is_g = (lane >= 2 * H) & (lane < 3 * H)

    whh = whh_ref[...]                                                         # (H, 4H)

    # ---- Phase 2: serial recurrence; 1 MXU push + 1 EUP tanh pass per step ---
    h = h0_ref[...]                                                            # (Bp, H)
    c = c0_ref[...]
    for t in range(T):               # T static -> full unroll, static slices
        lo = t * Bp
        gates = gx_ref[lo:lo + Bp, :] + jnp.dot(h, whh,
                                                preferred_element_type=f32)    # (Bp, 4H)
        # sigmoid(x) = 0.5*tanh(0.5*x) + 0.5  -> all four gates in one tanh.
        th = jnp.tanh(jnp.where(is_g, gates, 0.5 * gates))
        act = jnp.where(is_g, th, 0.5 * th + 0.5)
        i_g = act[:, 0 * H:1 * H]
        f_g = act[:, 1 * H:2 * H]
        g_g = act[:, 2 * H:3 * H]
        o_g = act[:, 3 * H:4 * H]
        c = f_g * c + i_g * g_g
        h = o_g * jnp.tanh(c)
        hs_ref[lo:lo + Bp, :] = h
    hout_ref[...] = h
    cout_ref[...] = c

    # ---- Phase 3: output head + softmax, batched & lane-dense (128 wide) -----
    logits = (jnp.dot(hs_ref[...], w3_ref[...], preferred_element_type=f32)
              + b3_ref[...])                                                   # (T*Bp, 128)
    m = jnp.max(logits, axis=-1, keepdims=True)
    e = jnp.exp(logits - m)              # pad lanes: exp(-1e9 - m) == 0 exactly
    denom = jnp.sum(e, axis=-1, keepdims=True)
    out_ref[...] = e / denom             # exact normalization (sums to 1)


def prepare_params(params):
    """One-time re-layout of PyTorch-style weights for the kernel. Cache & reuse."""
    f32 = jnp.float32
    H = HIDDEN
    w1a = jnp.concatenate([params["w1"].T, params["b1"][None, :]],
                          axis=0).astype(f32)                        # (INP+1, H)
    wih = params["w_ih"].T.astype(f32)                               # (H, 4H) [i,f,g,o]
    whh = params["w_hh"].T.astype(f32)                               # (H, 4H)
    bias = (params["b_ih"] + params["b_hh"])[None, :].astype(f32)    # (1, 4H)
    w3p = jnp.zeros((H, NACT_PAD), f32).at[:, :NACT].set(params["w3"].T.astype(f32))
    b3p = jnp.full((1, NACT_PAD), -1e9, f32).at[:, :NACT].set(params["b3"].astype(f32))
    return {"w1a": w1a, "wih": wih, "whh": whh, "bias": bias, "w3p": w3p, "b3p": b3p}


@jax.jit
def student_agent_forward(x, h, c, prepped):
    """x: (B, T, INP) f32.  h, c: (1, B, H).  Returns (probs (B*T, NACT), h, c)."""
    B, T, _ = x.shape
    H = HIDDEN
    Bp = ((B + 7) // 8) * 8              # pad batch to a full f32 sublane group
    pad = Bp - B

    x_tm = jnp.transpose(x, (1, 0, 2)).astype(jnp.float32)           # (T, B, INP)
    x_tm = jnp.concatenate([x_tm, jnp.ones((T, B, 1), jnp.float32)], axis=-1)
    x_tm = jnp.pad(x_tm, ((0, 0), (0, pad), (0, 0)))
    x2d = x_tm.reshape(T * Bp, INP + 1)                              # time-major rows
    h0 = jnp.pad(h[0].astype(jnp.float32), ((0, pad), (0, 0)))
    c0 = jnp.pad(c[0].astype(jnp.float32), ((0, pad), (0, 0)))

    vmem = pl.BlockSpec(memory_space=pltpu.MemorySpace.VMEM)
    out_tm, h_new, c_new = pl.pallas_call(
        _lstm_agent_kernel,
        out_shape=(
            jax.ShapeDtypeStruct((T * Bp, NACT_PAD), jnp.float32),
            jax.ShapeDtypeStruct((Bp, H), jnp.float32),
            jax.ShapeDtypeStruct((Bp, H), jnp.float32),
        ),
        in_specs=[vmem] * 9,
        out_specs=(vmem, vmem, vmem),
        scratch_shapes=[
            pltpu.VMEM((T * Bp, 4 * H), jnp.float32),   # lane-dense x-side gates
            pltpu.VMEM((T * Bp, H), jnp.float32),       # hidden states, all steps
        ],
    )(x2d, h0, c0, prepped["w1a"], prepped["wih"], prepped["whh"],
      prepped["bias"], prepped["w3p"], prepped["b3p"])

    # Tiny reorder (fused under jit): drop pad lanes / pad batch, go batch-major.
    probs = out_tm[:, :NACT].reshape(T, Bp, NACT)[:, :B, :]
    probs = jnp.transpose(probs, (1, 0, 2)).reshape(B * T, NACT)
    return probs, h_new[:B][None], c_new[:B][None]


def _reference_forward(x, h, c, params):
    """Pure-JAX reference mirroring the PyTorch module (for verification)."""
    B, T, _ = x.shape
    H = HIDDEN
    feat = jnp.maximum(jnp.einsum("bti,oi->bto", x, params["w1"]) + params["b1"], 0.0)

    def step(carry, xt):
        hh, cc = carry
        gates = (xt @ params["w_ih"].T + hh @ params["w_hh"].T
                 + params["b_ih"] + params["b_hh"])
        i = jax.nn.sigmoid(gates[:, 0 * H:1 * H])
        f = jax.nn.sigmoid(gates[:, 1 * H:2 * H])
        g = jnp.tanh(gates[:, 2 * H:3 * H])
        o = jax.nn.sigmoid(gates[:, 3 * H:4 * H])
        cc = f * cc + i * g
        hh = o * jnp.tanh(cc)
        return (hh, cc), hh

    (h_fin, c_fin), hs = lax.scan(step, (h[0], c[0]), jnp.transpose(feat, (1, 0, 2)))
    hs = jnp.transpose(hs, (1, 0, 2)).reshape(-1, H)
    logits = hs @ params["w3"].T + params["b3"]
    return jax.nn.softmax(logits, axis=-1), h_fin[None], c_fin[None]


def init_params(key):
    ks = jax.random.split(key, 8)
    bound1 = 1.0 / jnp.sqrt(INP)
    bound2 = 1.0 / jnp.sqrt(HIDDEN)
    u = lambda k, shape, b: jax.random.uniform(k, shape, jnp.float32, -b, b)
    return {
        "w1": u(ks[0], (HIDDEN, INP), bound1),
        "b1": u(ks[1], (HIDDEN,), bound1),
        "w_ih": u(ks[2], (4 * HIDDEN, HIDDEN), bound2),
        "w_hh": u(ks[3], (4 * HIDDEN, HIDDEN), bound2),
        "b_ih": u(ks[4], (4 * HIDDEN,), bound2),
        "b_hh": u(ks[5], (4 * HIDDEN,), bound2),
        "w3": u(ks[6], (NACT, HIDDEN), bound2),
        "b3": u(ks[7], (NACT,), bound2),
    }


if __name__ == "__main__":
    key = jax.random.PRNGKey(0)
    k_p, k_x = jax.random.split(key)
    params = init_params(k_p)
    prepped = prepare_params(params)      # one-time weight re-layout (cached)

    B, T = 2, 8
    x = jax.random.normal(k_x, (B, T, INP), jnp.float32)
    h0 = jnp.zeros((1, B, HIDDEN), jnp.float32)
    c0 = jnp.zeros((1, B, HIDDEN), jnp.float32)

    probs, h_new, c_new = student_agent_forward(x, h0, c0, prepped)
    jax.block_until_ready((probs, h_new, c_new))

    # Verify against pure-JAX reference of the PyTorch forward.
    r_probs, r_h, r_c = _reference_forward(x, h0, c0, params)
    assert probs.shape == (B * T, NACT)
    assert h_new.shape == (1, B, HIDDEN) and c_new.shape == (1, B, HIDDEN)
    assert jnp.allclose(jnp.sum(probs, axis=-1), 1.0, atol=1e-3)
    assert jnp.allclose(probs, r_probs, rtol=2e-3, atol=2e-3)
    assert jnp.allclose(h_new, r_h, rtol=1e-3, atol=1e-3)
    assert jnp.allclose(c_new, r_c, rtol=1e-3, atol=1e-3)

    print("KERNEL_OK")
</pallas_src>

<mosaic_0001>
module attributes {stable_mosaic.version = 11 : i64} {
  func.func @_lstm_agent_kernel(%arg0: memref<64x6xf32, #tpu.memory_space<vmem>>, %arg1: memref<8x32xf32, #tpu.memory_space<vmem>>, %arg2: memref<8x32xf32, #tpu.memory_space<vmem>>, %arg3: memref<6x32xf32, #tpu.memory_space<vmem>>, %arg4: memref<32x128xf32, #tpu.memory_space<vmem>>, %arg5: memref<32x128xf32, #tpu.memory_space<vmem>>, %arg6: memref<1x128xf32, #tpu.memory_space<vmem>>, %arg7: memref<32x128xf32, #tpu.memory_space<vmem>>, %arg8: memref<1x128xf32, #tpu.memory_space<vmem>>, %arg9: memref<64x128xf32, #tpu.memory_space<vmem>>, %arg10: memref<8x32xf32, #tpu.memory_space<vmem>>, %arg11: memref<8x32xf32, #tpu.memory_space<vmem>>, %arg12: memref<64x128xf32, #tpu.memory_space<vmem>>, %arg13: memref<64x32xf32, #tpu.memory_space<vmem>>) attributes {dimension_semantics = [], scalar_prefetch = 0 : i64, scratch_operands = 2 : i64, tpu.core_type = #tpu.core_type<tc>} {
    %c0 = arith.constant 0 : index
    %c0_0 = arith.constant 0 : index
    %0 = vector.load %arg0[%c0, %c0_0] : memref<64x6xf32, #tpu.memory_space<vmem>>, vector<64x6xf32>
    %c0_1 = arith.constant 0 : index
    %c0_2 = arith.constant 0 : index
    %1 = vector.load %arg3[%c0_1, %c0_2] : memref<6x32xf32, #tpu.memory_space<vmem>>, vector<6x32xf32>
    %cst = arith.constant dense<0.000000e+00> : vector<64x32xf32>
    %2 = tpu.matmul %0, %1, %cst {dimension_numbers = #tpu.dot_dimension_numbers<[1], [0], [0], [1], [0, 0, 1, 1], [], []>} : vector<64x6xf32>, vector<6x32xf32>, vector<64x32xf32> -> vector<64x32xf32>
    %cst_3 = arith.constant 0.000000e+00 : f32
    %3 = vector.broadcast %cst_3 : f32 to vector<64x32xf32>
    %4 = arith.maximumf %2, %3 : vector<64x32xf32>
    %c0_4 = arith.constant 0 : index
    %c0_5 = arith.constant 0 : index
    %5 = vector.load %arg4[%c0_4, %c0_5] : memref<32x128xf32, #tpu.memory_space<vmem>>, vector<32x128xf32>
    %cst_6 = arith.constant dense<0.000000e+00> : vector<64x128xf32>
    %6 = tpu.matmul %4, %5, %cst_6 {dimension_numbers = #tpu.dot_dimension_numbers<[1], [0], [0], [1], [0, 0, 1, 1], [], []>} : vector<64x32xf32>, vector<32x128xf32>, vector<64x128xf32> -> vector<64x128xf32>
    %c0_7 = arith.constant 0 : index
    %c0_8 = arith.constant 0 : index
    %7 = vector.load %arg6[%c0_7, %c0_8] : memref<1x128xf32, #tpu.memory_space<vmem>>, vector<1x128xf32>
    %8 = vector.broadcast %7 : vector<1x128xf32> to vector<64x128xf32>
    %9 = arith.addf %6, %8 : vector<64x128xf32>
    %c0_9 = arith.constant 0 : index
    %c0_10 = arith.constant 0 : index
    %10 = vector.load %arg12[%c0_9, %c0_10] : memref<64x128xf32, #tpu.memory_space<vmem>>, vector<64x128xf32>
    tpu.vector_store %arg12[%c0_9, %c0_10], %9 {strides = array<i32>} : memref<64x128xf32, #tpu.memory_space<vmem>>, vector<64x128xf32>,
    %11 = tpu.iota {dimensions = array<i32: 1>} : vector<8x128xi32>
    %c64_i32 = arith.constant 64 : i32
    %12 = vector.broadcast %c64_i32 : i32 to vector<8x128xi32>
    %13 = arith.cmpi sge, %11, %12 : vector<8x128xi32>
    %c96_i32 = arith.constant 96 : i32
    %14 = vector.broadcast %c96_i32 : i32 to vector<8x128xi32>
    %15 = arith.cmpi slt, %11, %14 : vector<8x128xi32>
    %16 = arith.andi %13, %15 : vector<8x128xi1>
    %c0_11 = arith.constant 0 : index
    %c0_12 = arith.constant 0 : index
    %17 = vector.load %arg5[%c0_11, %c0_12] : memref<32x128xf32, #tpu.memory_space<vmem>>, vector<32x128xf32>
    %c0_13 = arith.constant 0 : index
    %c0_14 = arith.constant 0 : index
    %18 = vector.load %arg1[%c0_13, %c0_14] : memref<8x32xf32, #tpu.memory_space<vmem>>, vector<8x32xf32>
    %c0_15 = arith.constant 0 : index
    %c0_16 = arith.constant 0 : index
    %19 = vector.load %arg2[%c0_15, %c0_16] : memref<8x32xf32, #tpu.memory_space<vmem>>, vector<8x32xf32>
    %c0_17 = arith.constant 0 : index
    %c0_18 = arith.constant 0 : index
    %20 = vector.load %arg12[%c0_17, %c0_18] : memref<64x128xf32, #tpu.memory_space<vmem>>, vector<8x128xf32>
    %cst_19 = arith.constant dense<0.000000e+00> : vector<8x128xf32>
    %21 = tpu.matmul %18, %17, %cst_19 {dimension_numbers = #tpu.dot_dimension_numbers<[1], [0], [0], [1], [0, 0, 1, 1], [], []>} : vector<8x32xf32>, vector<32x128xf32>, vector<8x128xf32> -> vector<8x128xf32>
    %22 = arith.addf %20, %21 : vector<8x128xf32>
    %cst_20 = arith.constant 5.000000e-01 : f32
    %23 = vector.broadcast %cst_20 : f32 to vector<8x128xf32>
    %24 = arith.mulf %23, %22 : vector<8x128xf32>
    %25 = arith.select %16, %22, %24 : vector<8x128xi1>, vector<8x128xf32>
    %26 = math.tanh %25 : vector<8x128xf32>
    %cst_21 = arith.constant 5.000000e-01 : f32
    %27 = vector.broadcast %cst_21 : f32 to vector<8x128xf32>
    %28 = arith.mulf %27, %26 : vector<8x128xf32>
    %cst_22 = arith.constant 5.000000e-01 : f32
    %29 = vector.broadcast %cst_22 : f32 to vector<8x128xf32>
    %30 = arith.addf %28, %29 : vector<8x128xf32>
    %31 = arith.select %16, %26, %30 : vector<8x128xi1>, vector<8x128xf32>
    %32 = vector.extract_strided_slice %31 {offsets = [0, 0], sizes = [8, 32], strides = [1, 1]} : vector<8x128xf32> to vector<8x32xf32>
    %33 = vector.extract_strided_slice %31 {offsets = [0, 32], sizes = [8, 32], strides = [1, 1]} : vector<8x128xf32> to vector<8x32xf32>
    %34 = vector.extract_strided_slice %31 {offsets = [0, 64], sizes = [8, 32], strides = [1, 1]} : vector<8x128xf32> to vector<8x32xf32>
    %35 = vector.extract_strided_slice %31 {offsets = [0, 96], sizes = [8, 32], strides = [1, 1]} : vector<8x128xf32> to vector<8x32xf32>
    %36 = arith.mulf %33, %19 : vector<8x32xf32>
    %37 = arith.mulf %32, %34 : vector<8x32xf32>
    %38 = arith.addf %36, %37 : vector<8x32xf32>
    %39 = math.tanh %38 : vector<8x32xf32>
    %40 = arith.mulf %35, %39 : vector<8x32xf32>
    %c0_23 = arith.constant 0 : index
    %c0_24 = arith.constant 0 : index
    %41 = vector.load %arg13[%c0_23, %c0_24] : memref<64x32xf32, #tpu.memory_space<vmem>>, vector<8x32xf32>
    tpu.vector_store %arg13[%c0_23, %c0_24], %40 {strides = array<i32>} : memref<64x32xf32, #tpu.memory_space<vmem>>, vector<8x32xf32>,
    %c8 = arith.constant 8 : index
    %c0_25 = arith.constant 0 : index
    %42 = vector.load %arg12[%c8, %c0_25] : memref<64x128xf32, #tpu.memory_space<vmem>>, vector<8x128xf32>
    %cst_26 = arith.constant dense<0.000000e+00> : vector<8x128xf32>
    %43 = tpu.matmul %40, %17, %cst_26 {dimension_numbers = #tpu.dot_dimension_numbers<[1], [0], [0], [1], [0, 0, 1, 1], [], []>} : vector<8x32xf32>, vector<32x128xf32>, vector<8x128xf32> -> vector<8x128xf32>
    %44 = arith.addf %42, %43 : vector<8x128xf32>
    %cst_27 = arith.constant 5.000000e-01 : f32
    %45 = vector.broadcast %cst_27 : f32 to vector<8x128xf32>
    %46 = arith.mulf %45, %44 : vector<8x128xf32>
    %47 = arith.select %16, %44, %46 : vector<8x128xi1>, vector<8x128xf32>
    %48 = math.tanh %47 : vector<8x128xf32>
    %cst_28 = arith.constant 5.000000e-01 : f32
    %49 = vector.broadcast %cst_28 : f32 to vector<8x128xf32>
    %50 = arith.mulf %49, %48 : vector<8x128xf32>
    %cst_29 = arith.constant 5.000000e-01 : f32
    %51 = vector.broadcast %cst_29 : f32 to vector<8x128xf32>
    %52 = arith.addf %50, %51 : vector<8x128xf32>
    %53 = arith.select %16, %48, %52 : vector<8x128xi1>, vector<8x128xf32>
    %54 = vector.extract_strided_slice %53 {offsets = [0, 0], sizes = [8, 32], strides = [1, 1]} : vector<8x128xf32> to vector<8x32xf32>
    %55 = vector.extract_strided_slice %53 {offsets = [0, 32], sizes = [8, 32], strides = [1, 1]} : vector<8x128xf32> to vector<8x32xf32>
    %56 = vector.extract_strided_slice %53 {offsets = [0, 64], sizes = [8, 32], strides = [1, 1]} : vector<8x128xf32> to vector<8x32xf32>
    %57 = vector.extract_strided_slice %53 {offsets = [0, 96], sizes = [8, 32], strides = [1, 1]} : vector<8x128xf32> to vector<8x32xf32>
    %58 = arith.mulf %55, %38 : vector<8x32xf32>
    %59 = arith.mulf %54, %56 : vector<8x32xf32>
    %60 = arith.addf %58, %59 : vector<8x32xf32>
    %61 = math.tanh %60 : vector<8x32xf32>
    %62 = arith.mulf %57, %61 : vector<8x32xf32>
    %c8_30 = arith.constant 8 : index
    %c0_31 = arith.constant 0 : index
    %63 = vector.load %arg13[%c8_30, %c0_31] : memref<64x32xf32, #tpu.memory_space<vmem>>, vector<8x32xf32>
    tpu.vector_store %arg13[%c8_30, %c0_31], %62 {strides = array<i32>} : memref<64x32xf32, #tpu.memory_space<vmem>>, vector<8x32xf32>,
    %c16 = arith.constant 16 : index
    %c0_32 = arith.constant 0 : index
    %64 = vector.load %arg12[%c16, %c0_32] : memref<64x128xf32, #tpu.memory_space<vmem>>, vector<8x128xf32>
    %cst_33 = arith.constant dense<0.000000e+00> : vector<8x128xf32>
    %65 = tpu.matmul %62, %17, %cst_33 {dimension_numbers = #tpu.dot_dimension_numbers<[1], [0], [0], [1], [0, 0, 1, 1], [], []>} : vector<8x32xf32>, vector<32x128xf32>, vector<8x128xf32> -> vector<8x128xf32>
    %66 = arith.addf %64, %65 : vector<8x128xf32>
    %cst_34 = arith.constant 5.000000e-01 : f32
    %67 = vector.broadcast %cst_34 : f32 to vector<8x128xf32>
    %68 = arith.mulf %67, %66 : vector<8x128xf32>
    %69 = arith.select %16, %66, %68 : vector<8x128xi1>, vector<8x128xf32>
    %70 = math.tanh %69 : vector<8x128xf32>
    %cst_35 = arith.constant 5.000000e-01 : f32
    %71 = vector.broadcast %cst_35 : f32 to vector<8x128xf32>
    %72 = arith.mulf %71, %70 : vector<8x128xf32>
    %cst_36 = arith.constant 5.000000e-01 : f32
    %73 = vector.broadcast %cst_36 : f32 to vector<8x128xf32>
    %74 = arith.addf %72, %73 : vector<8x128xf32>
    %75 = arith.select %16, %70, %74 : vector<8x128xi1>, vector<8x128xf32>
    %76 = vector.extract_strided_slice %75 {offsets = [0, 0], sizes = [8, 32], strides = [1, 1]} : vector<8x128xf32> to vector<8x32xf32>
    %77 = vector.extract_strided_slice %75 {offsets = [0, 32], sizes = [8, 32], strides = [1, 1]} : vector<8x128xf32> to vector<8x32xf32>
    %78 = vector.extract_strided_slice %75 {offsets = [0, 64], sizes = [8, 32], strides = [1, 1]} : vector<8x128xf32> to vector<8x32xf32>
    %79 = vector.extract_strided_slice %75 {offsets = [0, 96], sizes = [8, 32], strides = [1, 1]} : vector<8x128xf32> to vector<8x32xf32>
    %80 = arith.mulf %77, %60 : vector<8x32xf32>
    %81 = arith.mulf %76, %78 : vector<8x32xf32>
    %82 = arith.addf %80, %81 : vector<8x32xf32>
    %83 = math.tanh %82 : vector<8x32xf32>
    %84 = arith.mulf %79, %83 : vector<8x32xf32>
    %c16_37 = arith.constant 16 : index
    %c0_38 = arith.constant 0 : index
    %85 = vector.load %arg13[%c16_37, %c0_38] : memref<64x32xf32, #tpu.memory_space<vmem>>, vector<8x32xf32>
    tpu.vector_store %arg13[%c16_37, %c0_38], %84 {strides = array<i32>} : memref<64x32xf32, #tpu.memory_space<vmem>>, vector<8x32xf32>,
    %c24 = arith.constant 24 : index
    %c0_39 = arith.constant 0 : index
    %86 = vector.load %arg12[%c24, %c0_39] : memref<64x128xf32, #tpu.memory_space<vmem>>, vector<8x128xf32>
    %cst_40 = arith.constant dense<0.000000e+00> : vector<8x128xf32>
    %87 = tpu.matmul %84, %17, %cst_40 {dimension_numbers = #tpu.dot_dimension_numbers<[1], [0], [0], [1], [0, 0, 1, 1], [], []>} : vector<8x32xf32>, vector<32x128xf32>, vector<8x128xf32> -> vector<8x128xf32>
    %88 = arith.addf %86, %87 : vector<8x128xf32>
    %cst_41 = arith.constant 5.000000e-01 : f32
    %89 = vector.broadcast %cst_41 : f32 to vector<8x128xf32>
    %90 = arith.mulf %89, %88 : vector<8x128xf32>
    %91 = arith.select %16, %88, %90 : vector<8x128xi1>, vector<8x128xf32>
    %92 = math.tanh %91 : vector<8x128xf32>
    %cst_42 = arith.constant 5.000000e-01 : f32
    %93 = vector.broadcast %cst_42 : f32 to vector<8x128xf32>
    %94 = arith.mulf %93, %92 : vector<8x128xf32>
    %cst_43 = arith.constant 5.000000e-01 : f32
    %95 = vector.broadcast %cst_43 : f32 to vector<8x128xf32>
    %96 = arith.addf %94, %95 : vector<8x128xf32>
    %97 = arith.select %16, %92, %96 : vector<8x128xi1>, vector<8x128xf32>
    %98 = vector.extract_strided_slice %97 {offsets = [0, 0], sizes = [8, 32], strides = [1, 1]} : vector<8x128xf32> to vector<8x32xf32>
    %99 = vector.extract_strided_slice %97 {offsets = [0, 32], sizes = [8, 32], strides = [1, 1]} : vector<8x128xf32> to vector<8x32xf32>
    %100 = vector.extract_strided_slice %97 {offsets = [0, 64], sizes = [8, 32], strides = [1, 1]} : vector<8x128xf32> to vector<8x32xf32>
    %101 = vector.extract_strided_slice %97 {offsets = [0, 96], sizes = [8, 32], strides = [1, 1]} : vector<8x128xf32> to vector<8x32xf32>
    %102 = arith.mulf %99, %82 : vector<8x32xf32>
    %103 = arith.mulf %98, %100 : vector<8x32xf32>
    %104 = arith.addf %102, %103 : vector<8x32xf32>
    %105 = math.tanh %104 : vector<8x32xf32>
    %106 = arith.mulf %101, %105 : vector<8x32xf32>
    %c24_44 = arith.constant 24 : index
    %c0_45 = arith.constant 0 : index
    %107 = vector.load %arg13[%c24_44, %c0_45] : memref<64x32xf32, #tpu.memory_space<vmem>>, vector<8x32xf32>
    tpu.vector_store %arg13[%c24_44, %c0_45], %106 {strides = array<i32>} : memref<64x32xf32, #tpu.memory_space<vmem>>, vector<8x32xf32>,
    %c32 = arith.constant 32 : index
    %c0_46 = arith.constant 0 : index
    %108 = vector.load %arg12[%c32, %c0_46] : memref<64x128xf32, #tpu.memory_space<vmem>>, vector<8x128xf32>
    %cst_47 = arith.constant dense<0.000000e+00> : vector<8x128xf32>
    %109 = tpu.matmul %106, %17, %cst_47 {dimension_numbers = #tpu.dot_dimension_numbers<[1], [0], [0], [1], [0, 0, 1, 1], [], []>} : vector<8x32xf32>, vector<32x128xf32>, vector<8x128xf32> -> vector<8x128xf32>
    %110 = arith.addf %108, %109 : vector<8x128xf32>
    %cst_48 = arith.constant 5.000000e-01 : f32
    %111 = vector.broadcast %cst_48 : f32 to vector<8x128xf32>
    %112 = arith.mulf %111, %110 : vector<8x128xf32>
    %113 = arith.select %16, %110, %112 : vector<8x128xi1>, vector<8x128xf32>
    %114 = math.tanh %113 : vector<8x128xf32>
    %cst_49 = arith.constant 5.000000e-01 : f32
    %115 = vector.broadcast %cst_49 : f32 to vector<8x128xf32>
    %116 = arith.mulf %115, %114 : vector<8x128xf32>
    %cst_50 = arith.constant 5.000000e-01 : f32
    %117 = vector.broadcast %cst_50 : f32 to vector<8x128xf32>
    %118 = arith.addf %116, %117 : vector<8x128xf32>
    %119 = arith.select %16, %114, %118 : vector<8x128xi1>, vector<8x128xf32>
    %120 = vector.extract_strided_slice %119 {offsets = [0, 0], sizes = [8, 32], strides = [1, 1]} : vector<8x128xf32> to vector<8x32xf32>
    %121 = vector.extract_strided_slice %119 {offsets = [0, 32], sizes = [8, 32], strides = [1, 1]} : vector<8x128xf32> to vector<8x32xf32>
    %122 = vector.extract_strided_slice %119 {offsets = [0, 64], sizes = [8, 32], strides = [1, 1]} : vector<8x128xf32> to vector<8x32xf32>
    %123 = vector.extract_strided_slice %119 {offsets = [0, 96], sizes = [8, 32], strides = [1, 1]} : vector<8x128xf32> to vector<8x32xf32>
    %124 = arith.mulf %121, %104 : vector<8x32xf32>
    %125 = arith.mulf %120, %122 : vector<8x32xf32>
    %126 = arith.addf %124, %125 : vector<8x32xf32>
    %127 = math.tanh %126 : vector<8x32xf32>
    %128 = arith.mulf %123, %127 : vector<8x32xf32>
    %c32_51 = arith.constant 32 : index
    %c0_52 = arith.constant 0 : index
    %129 = vector.load %arg13[%c32_51, %c0_52] : memref<64x32xf32, #tpu.memory_space<vmem>>, vector<8x32xf32>
    tpu.vector_store %arg13[%c32_51, %c0_52], %128 {strides = array<i32>} : memref<64x32xf32, #tpu.memory_space<vmem>>, vector<8x32xf32>,
    %c40 = arith.constant 40 : index
    %c0_53 = arith.constant 0 : index
    %130 = vector.load %arg12[%c40, %c0_53] : memref<64x128xf32, #tpu.memory_space<vmem>>, vector<8x128xf32>
    %cst_54 = arith.constant dense<0.000000e+00> : vector<8x128xf32>
    %131 = tpu.matmul %128, %17, %cst_54 {dimension_numbers = #tpu.dot_dimension_numbers<[1], [0], [0], [1], [0, 0, 1, 1], [], []>} : vector<8x32xf32>, vector<32x128xf32>, vector<8x128xf32> -> vector<8x128xf32>
    %132 = arith.addf %130, %131 : vector<8x128xf32>
    %cst_55 = arith.constant 5.000000e-01 : f32
    %133 = vector.broadcast %cst_55 : f32 to vector<8x128xf32>
    %134 = arith.mulf %133, %132 : vector<8x128xf32>
    %135 = arith.select %16, %132, %134 : vector<8x128xi1>, vector<8x128xf32>
    %136 = math.tanh %135 : vector<8x128xf32>
    %cst_56 = arith.constant 5.000000e-01 : f32
    %137 = vector.broadcast %cst_56 : f32 to vector<8x128xf32>
    %138 = arith.mulf %137, %136 : vector<8x128xf32>
    %cst_57 = arith.constant 5.000000e-01 : f32
    %139 = vector.broadcast %cst_57 : f32 to vector<8x128xf32>
    %140 = arith.addf %138, %139 : vector<8x128xf32>
    %141 = arith.select %16, %136, %140 : vector<8x128xi1>, vector<8x128xf32>
    %142 = vector.extract_strided_slice %141 {offsets = [0, 0], sizes = [8, 32], strides = [1, 1]} : vector<8x128xf32> to vector<8x32xf32>
    %143 = vector.extract_strided_slice %141 {offsets = [0, 32], sizes = [8, 32], strides = [1, 1]} : vector<8x128xf32> to vector<8x32xf32>
    %144 = vector.extract_strided_slice %141 {offsets = [0, 64], sizes = [8, 32], strides = [1, 1]} : vector<8x128xf32> to vector<8x32xf32>
    %145 = vector.extract_strided_slice %141 {offsets = [0, 96], sizes = [8, 32], strides = [1, 1]} : vector<8x128xf32> to vector<8x32xf32>
    %146 = arith.mulf %143, %126 : vector<8x32xf32>
    %147 = arith.mulf %142, %144 : vector<8x32xf32>
    %148 = arith.addf %146, %147 : vector<8x32xf32>
    %149 = math.tanh %148 : vector<8x32xf32>
    %150 = arith.mulf %145, %149 : vector<8x32xf32>
    %c40_58 = arith.constant 40 : index
    %c0_59 = arith.constant 0 : index
    %151 = vector.load %arg13[%c40_58, %c0_59] : memref<64x32xf32, #tpu.memory_space<vmem>>, vector<8x32xf32>
    tpu.vector_store %arg13[%c40_58, %c0_59], %150 {strides = array<i32>} : memref<64x32xf32, #tpu.memory_space<vmem>>, vector<8x32xf32>,
    %c48 = arith.constant 48 : index
    %c0_60 = arith.constant 0 : index
    %152 = vector.load %arg12[%c48, %c0_60] : memref<64x128xf32, #tpu.memory_space<vmem>>, vector<8x128xf32>
    %cst_61 = arith.constant dense<0.000000e+00> : vector<8x128xf32>
    %153 = tpu.matmul %150, %17, %cst_61 {dimension_numbers = #tpu.dot_dimension_numbers<[1], [0], [0], [1], [0, 0, 1, 1], [], []>} : vector<8x32xf32>, vector<32x128xf32>, vector<8x128xf32> -> vector<8x128xf32>
    %154 = arith.addf %152, %153 : vector<8x128xf32>
    %cst_62 = arith.constant 5.000000e-01 : f32
    %155 = vector.broadcast %cst_62 : f32 to vector<8x128xf32>
    %156 = arith.mulf %155, %154 : vector<8x128xf32>
    %157 = arith.select %16, %154, %156 : vector<8x128xi1>, vector<8x128xf32>
    %158 = math.tanh %157 : vector<8x128xf32>
    %cst_63 = arith.constant 5.000000e-01 : f32
    %159 = vector.broadcast %cst_63 : f32 to vector<8x128xf32>
    %160 = arith.mulf %159, %158 : vector<8x128xf32>
    %cst_64 = arith.constant 5.000000e-01 : f32
    %161 = vector.broadcast %cst_64 : f32 to vector<8x128xf32>
    %162 = arith.addf %160, %161 : vector<8x128xf32>
    %163 = arith.select %16, %158, %162 : vector<8x128xi1>, vector<8x128xf32>
    %164 = vector.extract_strided_slice %163 {offsets = [0, 0], sizes = [8, 32], strides = [1, 1]} : vector<8x128xf32> to vector<8x32xf32>
    %165 = vector.extract_strided_slice %163 {offsets = [0, 32], sizes = [8, 32], strides = [1, 1]} : vector<8x128xf32> to vector<8x32xf32>
    %166 = vector.extract_strided_slice %163 {offsets = [0, 64], sizes = [8, 32], strides = [1, 1]} : vector<8x128xf32> to vector<8x32xf32>
    %167 = vector.extract_strided_slice %163 {offsets = [0, 96], sizes = [8, 32], strides = [1, 1]} : vector<8x128xf32> to vector<8x32xf32>
    %168 = arith.mulf %165, %148 : vector<8x32xf32>
    %169 = arith.mulf %164, %166 : vector<8x32xf32>
    %170 = arith.addf %168, %169 : vector<8x32xf32>
    %171 = math.tanh %170 : vector<8x32xf32>
    %172 = arith.mulf %167, %171 : vector<8x32xf32>
    %c48_65 = arith.constant 48 : index
    %c0_66 = arith.constant 0 : index
    %173 = vector.load %arg13[%c48_65, %c0_66] : memref<64x32xf32, #tpu.memory_space<vmem>>, vector<8x32xf32>
    tpu.vector_store %arg13[%c48_65, %c0_66], %172 {strides = array<i32>} : memref<64x32xf32, #tpu.memory_space<vmem>>, vector<8x32xf32>,
    %c56 = arith.constant 56 : index
    %c0_67 = arith.constant 0 : index
    %174 = vector.load %arg12[%c56, %c0_67] : memref<64x128xf32, #tpu.memory_space<vmem>>, vector<8x128xf32>
    %cst_68 = arith.constant dense<0.000000e+00> : vector<8x128xf32>
    %175 = tpu.matmul %172, %17, %cst_68 {dimension_numbers = #tpu.dot_dimension_numbers<[1], [0], [0], [1], [0, 0, 1, 1], [], []>} : vector<8x32xf32>, vector<32x128xf32>, vector<8x128xf32> -> vector<8x128xf32>
    %176 = arith.addf %174, %175 : vector<8x128xf32>
    %cst_69 = arith.constant 5.000000e-01 : f32
    %177 = vector.broadcast %cst_69 : f32 to vector<8x128xf32>
    %178 = arith.mulf %177, %176 : vector<8x128xf32>
    %179 = arith.select %16, %176, %178 : vector<8x128xi1>, vector<8x128xf32>
    %180 = math.tanh %179 : vector<8x128xf32>
    %cst_70 = arith.constant 5.000000e-01 : f32
    %181 = vector.broadcast %cst_70 : f32 to vector<8x128xf32>
    %182 = arith.mulf %181, %180 : vector<8x128xf32>
    %cst_71 = arith.constant 5.000000e-01 : f32
    %183 = vector.broadcast %cst_71 : f32 to vector<8x128xf32>
    %184 = arith.addf %182, %183 : vector<8x128xf32>
    %185 = arith.select %16, %180, %184 : vector<8x128xi1>, vector<8x128xf32>
    %186 = vector.extract_strided_slice %185 {offsets = [0, 0], sizes = [8, 32], strides = [1, 1]} : vector<8x128xf32> to vector<8x32xf32>
    %187 = vector.extract_strided_slice %185 {offsets = [0, 32], sizes = [8, 32], strides = [1, 1]} : vector<8x128xf32> to vector<8x32xf32>
    %188 = vector.extract_strided_slice %185 {offsets = [0, 64], sizes = [8, 32], strides = [1, 1]} : vector<8x128xf32> to vector<8x32xf32>
    %189 = vector.extract_strided_slice %185 {offsets = [0, 96], sizes = [8, 32], strides = [1, 1]} : vector<8x128xf32> to vector<8x32xf32>
    %190 = arith.mulf %187, %170 : vector<8x32xf32>
    %191 = arith.mulf %186, %188 : vector<8x32xf32>
    %192 = arith.addf %190, %191 : vector<8x32xf32>
    %193 = math.tanh %192 : vector<8x32xf32>
    %194 = arith.mulf %189, %193 : vector<8x32xf32>
    %c56_72 = arith.constant 56 : index
    %c0_73 = arith.constant 0 : index
    %195 = vector.load %arg13[%c56_72, %c0_73] : memref<64x32xf32, #tpu.memory_space<vmem>>, vector<8x32xf32>
    tpu.vector_store %arg13[%c56_72, %c0_73], %194 {strides = array<i32>} : memref<64x32xf32, #tpu.memory_space<vmem>>, vector<8x32xf32>,
    %c0_74 = arith.constant 0 : index
    %c0_75 = arith.constant 0 : index
    %196 = vector.load %arg10[%c0_74, %c0_75] : memref<8x32xf32, #tpu.memory_space<vmem>>, vector<8x32xf32>
    tpu.vector_store %arg10[%c0_74, %c0_75], %194 {strides = array<i32>} : memref<8x32xf32, #tpu.memory_space<vmem>>, vector<8x32xf32>,
    %c0_76 = arith.constant 0 : index
    %c0_77 = arith.constant 0 : index
    %197 = vector.load %arg11[%c0_76, %c0_77] : memref<8x32xf32, #tpu.memory_space<vmem>>, vector<8x32xf32>
    tpu.vector_store %arg11[%c0_76, %c0_77], %192 {strides = array<i32>} : memref<8x32xf32, #tpu.memory_space<vmem>>, vector<8x32xf32>,
    %c0_78 = arith.constant 0 : index
    %c0_79 = arith.constant 0 : index
    %198 = vector.load %arg13[%c0_78, %c0_79] : memref<64x32xf32, #tpu.memory_space<vmem>>, vector<64x32xf32>
    %c0_80 = arith.constant 0 : index
    %c0_81 = arith.constant 0 : index
    %199 = vector.load %arg7[%c0_80, %c0_81] : memref<32x128xf32, #tpu.memory_space<vmem>>, vector<32x128xf32>
    %cst_82 = arith.constant dense<0.000000e+00> : vector<64x128xf32>
    %200 = tpu.matmul %198, %199, %cst_82 {dimension_numbers = #tpu.dot_dimension_numbers<[1], [0], [0], [1], [0, 0, 1, 1], [], []>} : vector<64x32xf32>, vector<32x128xf32>, vector<64x128xf32> -> vector<64x128xf32>
    %c0_83 = arith.constant 0 : index
    %c0_84 = arith.constant 0 : index
    %201 = vector.load %arg8[%c0_83, %c0_84] : memref<1x128xf32, #tpu.memory_space<vmem>>, vector<1x128xf32>
    %202 = vector.broadcast %201 : vector<1x128xf32> to vector<64x128xf32>
    %203 = arith.addf %200, %202 : vector<64x128xf32>
    %cst_85 = arith.constant dense<0xFF800000> : vector<64xf32>
    %204 = vector.multi_reduction <maximumf>, %203, %cst_85 [1] : vector<64x128xf32> to vector<64xf32>
    %205 = vector.shape_cast %204 : vector<64xf32> to vector<64x1xf32>
    %206 = vector.broadcast %205 : vector<64x1xf32> to vector<64x128xf32>
    %207 = arith.subf %203, %206 : vector<64x128xf32>
    %208 = math.exp %207 : vector<64x128xf32>
    %cst_86 = arith.constant dense<0.000000e+00> : vector<64xf32>
    %209 = vector.multi_reduction <add>, %208, %cst_86 [1] : vector<64x128xf32> to vector<64xf32>
    %210 = vector.shape_cast %209 : vector<64xf32> to vector<64x1xf32>
    %211 = vector.broadcast %210 : vector<64x1xf32> to vector<64x128xf32>
    %212 = arith.divf %208, %211 : vector<64x128xf32>
    %c0_87 = arith.constant 0 : index
    %c0_88 = arith.constant 0 : index
    %213 = vector.load %arg9[%c0_87, %c0_88] : memref<64x128xf32, #tpu.memory_space<vmem>>, vector<64x128xf32>
    tpu.vector_store %arg9[%c0_87, %c0_88], %212 {strides = array<i32>} : memref<64x128xf32, #tpu.memory_space<vmem>>, vector<64x128xf32>,
    return
  }
}

</mosaic_0001>

<bundles_post_ra>
// kernel: student_agent_forward.1
= control target key start
LH: loop header
LB: loop body
LE: loop exit
PB: predicated region body
PF: predicated region fallthrough
CT: control target
= control target key end

     0   :  { %vm69_vm0 = vcmask 1045504   ;;  %vm44_vm1 = vcmask 48128   ;;  %v1734_v11 = vmov 0.0   ;;  %vm197_vm2 = vcmask 261120   ;;  %s1737_s13 = smov 32   ;;  %s2135_s3 = inlined_call_operand.vmem [shape: f32[6,32], index: 3, kind: input, shape index: {}]   ;;  %s2136_s0 = inlined_call_operand.vmem [shape: f32[64,6], index: 0, kind: input, shape index: {}]   ;;  %s2137_s4 = inlined_call_operand.vmem [shape: f32[32,128], index: 4, kind: input, shape index: {}]   ;;  %s2138_s5 = inlined_call_operand.vmem [shape: f32[32,128], index: 5, kind: input, shape index: {}]   ;;  %s2139_s1 = inlined_call_operand.vmem [shape: f32[8,32], index: 1, kind: input, shape index: {}]   ;;  %s2140_s6 = inlined_call_operand.vmem [shape: f32[1,128], index: 6, kind: input, shape index: {}]   ;;  %s2141_s2 = inlined_call_operand.vmem [shape: f32[8,32], index: 2, kind: input, shape index: {}]   ;;  %s2142_s7 = inlined_call_operand.vmem [shape: f32[32,128], index: 7, kind: input, shape index: {}]   ;;  %s2143_s8 = inlined_call_operand.vmem [shape: f32[1,128], index: 8, kind: input, shape index: {}]   ;;  %s2144_s10 = inlined_call_operand.vmem [shape: f32[8,32], index: 10, kind: output, shape index: {1}]   ;;  %s2145_s9 = inlined_call_operand.vmem [shape: f32[64,128], index: 9, kind: output, shape index: {0}]   ;;  %s2146_s11 = inlined_call_operand.vmem [shape: f32[8,32], index: 11, kind: output, shape index: {2}]  }
   0x1   :  { %v43_v0 = vld [vmem:[%s2135_s3] sm:$0x3f]  ;;  %v36_v2 = vld [vmem:[%s2136_s0 + $0x8] sm:$0xff]  ;;  %v37_v3 = vld [vmem:[%s2136_s0 + $0x10] sm:$0xff]  ;;  %vm1735_vm3 = vmmov 0   ;;  %v335_v37 = vlaneseq }
   0x2   :  { %v35_v1 = vld [vmem:[%s2136_s0] sm:$0xff]  ;;  %1521 = vmatprep.subr.msk.mxu0 %vm69_vm0, %v43_v0  ;;  %1663 = vmatprep.subr.msk.mxu1 %vm69_vm0, %v43_v0  ;;  %v40_v5 = vld [vmem:[%s2136_s0 + $0x28] sm:$0xff]  ;;  %v41_v6 = vld [vmem:[%s2136_s0 + $0x30] sm:$0xff] }
   0x3   :  { %1523 = vmatprep.mubr.msk.f32.mxu0 %vm44_vm1, %v35_v1  ;;  %v39_v4 = vld [vmem:[%s2136_s0 + $0x20] sm:$0xff]  ;;  %1522 = vmatpush3.msk.msra.mxu0 %vm69_vm0, %v43_v0  ;;  %v189_v7 = vld [vmem:[%s2137_s4 + $0x18] sm:$0xff]  ;;  %v188_v9 = vld [vmem:[%s2137_s4 + $0x10] sm:$0xff]  ;;  %v336_v39 = vand.u32 127, %v335_v37 }
   0x4   :  { %1524 = vmatmul.mubr.msk.f32.vlgmr.msra.gmra.mxu0 %vm44_vm1, %v36_v2  ;;  %1664 = vmatpush3.msk.msra.mxu1 %vm69_vm0, %v43_v0  ;;  %v38_v8 = vld [vmem:[%s2136_s0 + $0x18] sm:$0xff]  ;;  %v187_v13 = vld [vmem:[%s2137_s4 + $0x8] sm:$0xff]  ;;  %v1854_v14 = vld [vmem:[%s2138_s5 + $0x10] sm:$0xff] }
   0x5   :  { %1526 = vmatprep.mubr.msk.f32.mxu0 %vm44_vm1, %v37_v3  ;;  %1529 = vmatprep.mubr.msk.f32.mxu1 %vm44_vm1, %v39_v4  ;;  %v42_v10 = vld [vmem:[%s2136_s0 + $0x38] sm:$0xff]  ;;  %v186_v15 = vld [vmem:[%s2137_s4] sm:$0xff]  ;;  %v1864_v16 = vld [vmem:[%s2138_s5 + $0x8] sm:$0xff]  ;;  %vm337_vm4 = vcmp.ge.s32.totalorder %v336_v39, 64  ;;  %vm338_vm5 = vcmp.lt.s32.totalorder %v336_v39, 96 }
   0x6   :  { %1530 = vmatmul.mubr.msk.f32.vlgmr.msra.gmra.mxu1 %vm44_vm1, %v40_v5  ;;  %1535 = vmatprep.subr.mxu1 %v189_v7  ;;  %v1844_v12 = vld [vmem:[%s2138_s5 + $0x18] sm:$0xff]  ;;  %v1871_v17 = vld [vmem:[%s2138_s5] sm:$0xff]  ;;  %vm1917_vm6 = vmand %vm337_vm4, %vm338_vm5  ;;  %s1738_s5 = smov 96  }
   0x7   :  { %1532 = vmatprep.mubr.msk.f32.mxu1 %vm44_vm1, %v41_v6  ;;  %1536 = vmatpush3.msra.mxu1 %v189_v7  ;;  %v344_v18 = vld [vmem:[%s2139_s1] sm:$0xff] }
   0x8   :  { %1527 = vmatmul.mubr.msk.f32.gmra.mxu0 %vm44_vm1, %v38_v8  ;;  %1537 = vmatprep.subr.mxu1 %v188_v9  ;;  %v1913_v38 = vld [vmem:[%s2140_s6] ss:$0 sm:$0xff]  ;;  %s1736_s6 = smov 64  }
   0x9   :  { %1538 = vmatpush3.msra.mxu1 %v188_v9  ;;  %1555 = vmatprep.subr.mxu0 %v1734_v11  ;;  %v345_v62 = vld [vmem:[%s2141_s2] sm:$0xff] }
   0xa   :  { %1533 = vmatmul.mubr.msk.f32.gmra.mxu1 %vm44_vm1, %v42_v10  ;;  %1556 = vmatpush3.msra.mxu0 %v1844_v12  ;;  %v1439_v45 = vld [vmem:[%s2143_s8] ss:$0 sm:$0xff] }
   0xb   :  { %1539 = vmatprep.subr.mxu1 %v187_v13  ;;  %1557 = vmatprep.subr.mxu0 %v1734_v11 }
   0xc   :  { %1540 = vmatpush3.msra.mxu1 %v187_v13  ;;  %1558 = vmatpush3.msra.mxu0 %v1854_v14 }
   0xd   :  { %1541 = vmatprep.subr.mxu1 %v186_v15  ;;  %1559 = vmatprep.subr.mxu0 %v1734_v11 }
   0xe   :  { %1542 = vmatpush3.msra.mxu1 %v186_v15  ;;  %1560 = vmatpush3.msra.mxu0 %v1864_v16 }
   0xf   :  { %1561 = vmatprep.subr.mxu0 %v1734_v11  ;;  %1566 = vmatprep.subr.mxu1 %v1734_v11 }
  0x10   :  { %1562 = vmatpush3.msra.mxu0 %v1871_v17  ;;  %1563 = vmatprep.mubr.msk.f32.mxu0 %vm1735_vm3, %v1734_v11 }
  0x11   :  { %1564 = vmatmul.mubr.msk.f32.vlgmr.msra.gmra.mxu0 %vm197_vm2, %v344_v18  ;;  %1577 = vmatprep.subr.mxu0 %v1734_v11 }
  0x12   :  { %1578 = vmatpush3.msra.mxu0 %v1844_v12  ;;  %1585 = vmatprep.mubr.msk.f32.mxu0 %vm1735_vm3, %v1734_v11 }
  0x13   :  { %1579 = vmatprep.subr.mxu0 %v1734_v11 }
  0x14   :  { %1580 = vmatpush3.msra.mxu0 %v1854_v14 }
  0x15   :  { %1581 = vmatprep.subr.mxu0 %v1734_v11 }
  0x16   :  { %1582 = vmatpush3.msra.mxu0 %v1864_v16 }
  0x17   :  { %1583 = vmatprep.subr.mxu0 %v1734_v11 }
  0x18   :  { %1584 = vmatpush3.msra.mxu0 %v1871_v17 }
  0x19   :  { %1599 = vmatprep.subr.mxu0 %v1734_v11 }
  0xc4   :  { %v1525_v19 = vpop.f32.mrf.mxu0 }
  0xc5   :  { %v179_v23 = vmax.f32 %v1525_v19, 0.0 }
  0xc6   :  { %v139_v20 = vpop.f32.mrf.mxu0  ;;  %v1531_v21 = vpop.f32.mrf.mxu1 }
  0xc7   :  { %v178_v22 = vmax.f32 %v139_v20, 0.0  ;;  %v183_v32 = vmax.f32 %v1531_v21, 0.0 }
  0xc8   :  { %v1528_v24 = vpop.f32.mrf.mxu0  ;;  %v159_v25 = vpop.f32.mrf.mxu1 }
  0xc9   :  { %1543 = vmatprep.mubr.msk.f32.mxu1 %vm197_vm2, %v178_v22  ;;  %v181_v26 = vmax.f32 %v1528_v24, 0.0  ;;  %v182_v30 = vmax.f32 %v159_v25, 0.0 }
  0xca   :  { %1544 = vmatmul.mubr.msk.f32.vlgmr.msra.gmra.mxu1 %vm197_vm2, %v179_v23  ;;  %v149_v27 = vpop.f32.mrf.mxu0  ;;  %v1534_v28 = vpop.f32.mrf.mxu1 }
  0xcb   :  { %v180_v29 = vmax.f32 %v149_v27, 0.0  ;;  %1567 = vmatpush3.msra.mxu1 %v1844_v12  ;;  %v185_v34 = vmax.f32 %v1534_v28, 0.0 }
  0xcc   :  { %v169_v31 = vpop.f32.mrf.mxu1  ;;  %1568 = vmatprep.subr.mxu1 %v1734_v11 }
  0xcd   :  { %1546 = vmatprep.mubr.msk.f32.mxu1 %vm197_vm2, %v180_v29  ;;  %1569 = vmatpush3.msra.mxu1 %v1854_v14  ;;  %v184_v33 = vmax.f32 %v169_v31, 0.0 }
  0xce   :  { %1547 = vmatmul.mubr.msk.f32.gmra.mxu1 %vm197_vm2, %v181_v26  ;;  %1570 = vmatprep.subr.mxu1 %v1734_v11 }
  0xcf   :  { %1549 = vmatprep.mubr.msk.f32.mxu1 %vm197_vm2, %v182_v30  ;;  %1571 = vmatpush3.msra.mxu1 %v1864_v16 }
  0xd0   :  { %1572 = vmatprep.subr.mxu1 %v1734_v11 }
  0xd1   :  { %1573 = vmatpush3.msra.mxu1 %v1871_v17  ;;  %v416_v35 = vpop.f32.mrf.mxu0 }
  0xd2   :  { %1550 = vmatmul.mubr.msk.f32.gmra.mxu1 %vm197_vm2, %v183_v32  ;;  %1588 = vmatprep.subr.mxu1 %v1734_v11 }
  0xd3   :  { %1552 = vmatprep.mubr.msk.f32.mxu1 %vm197_vm2, %v184_v33  ;;  %v1565_v36 = vpop.f32.mrf.mxu0 }
  0xd6   :  { %1553 = vmatmul.mubr.msk.f32.gmra.mxu1 %vm197_vm2, %v185_v34 }
  0xd7   :  { %1574 = vmatprep.mubr.msk.f32.mxu1 %vm1735_vm3, %v1734_v11 }
 0x18a   :  { %v1545_v40 = vpop.f32.mrf.mxu1 }
 0x18b   :  { %v294_v41 = vadd.f32 %v1545_v40, %v1913_v38 }
 0x18c   :  { %v288_v42 = vpop.f32.mrf.mxu1 }
 0x18d   :  { %v289_v43 = vadd.f32 %v1913_v38, %v288_v42 }
 0x18e   :  { %v1548_v48 = vpop.f32.mrf.mxu1 }
 0x18f   :  { %v420_v44 = vadd.f32 %v416_v35, %v289_v43  ;;  %v1924_v49 = vadd.f32 %v1548_v48, %v1913_v38 }
 0x190   :  { %v298_v50 = vpop.f32.mrf.mxu1 }
 0x191   :  { %v421_v46 = vmul.f32 0.5, %v420_v44  ;;  %v1927_v52 = vadd.f32 %v1913_v38, %v298_v50 }
 0x192   :  { %v1551_v54 = vpop.f32.mrf.mxu1 }
 0x193   :  { %v422_v47 = vsel %vm1917_vm6, %v420_v44, %v421_v46  ;;  %v1930_v55 = vadd.f32 %v1551_v54, %v1913_v38 }
 0x194   :  { %1670 = vtanh.f32 %v422_v47  ;;  %v308_v57 = vpop.f32.mrf.mxu1 }
 0x195   :  { %v1933_v58 = vadd.f32 %v1913_v38, %v308_v57 }
 0x196   :  { %v1554_v60 = vpop.f32.mrf.mxu1 }
 0x197   :  { %v1939_v61 = vadd.f32 %v1554_v60, %v1913_v38 }
 0x198   :  { %v1960_v9 = vpop.f32.mrf.mxu1 }
 0x1a1   :  { %v1671_v51 = vpop.eup %1670 }
 0x1a2   :  { %v424_v53 = vmul.f32 0.5, %v1671_v51 }
 0x1a4   :  { %v425_v56 = vadd.f32 0.5, %v424_v53 }
 0x1a6   :  { %v426_v59 = vsel %vm1917_vm6, %v1671_v51, %v425_v56 }
 0x1a7   :  { %433 = vrot.lane.b32.xlu0 %v426_v59, %s1736_s6 }
 0x1ab   :  { %428 = vrot.lane.b32.xlu0 %v345_v62, %s1737_s13 }
 0x219   :  { %v434_v63 = vpop.permute.xlu0 %433 }
 0x21a   :  { %v436_v0 = vmul.f32 %v434_v63, %v426_v59 }
 0x21c   :  { %438 = vrot.lane.b32.xlu1 %v436_v0, %s1737_s13 }
 0x21d   :  { %v429_v1 = vpop.permute.xlu0 %428 }
 0x21e   :  { %v431_v2 = vmul.f32 %v429_v1, %v426_v59 }
 0x28e   :  { %v439_v3 = vpop.permute.xlu1 %438 }
 0x28f   :  { %v441_v4 = vadd.f32 %v439_v3, %v431_v2 }
 0x291   :  { %1672 = vtanh.f32 %v441_v4 }
 0x29e   :  { %v1673_v5 = vpop.eup %1672 }
 0x29f   :  { %444 = vrot.lane.b32.xlu1 %v1673_v5, %s1736_s6 }
 0x311   :  { %v445_v6 = vpop.permute.xlu1 %444 }
 0x312   :  { %v447_v7 = vmul.f32 %v445_v6, %v426_v59 }
 0x314   :  { %449 = vrot.lane.b32.xlu0 %v447_v7, %s1737_s13 }
 0x386   :  { %v450_v8 = vpop.permute.xlu0 %449 }
 0x387   :  { %452 = vst.msk [vmem:[#allocation3] sm:$0xff] %vm197_vm2, %v450_v8  ;;  %1575 = vmatmul.mubr.msk.f32.vlgmr.msra.gmra.mxu1 %vm197_vm2, %v450_v8 }
 0x388   :  { %1589 = vmatpush3.msra.mxu1 %v1844_v12  ;;  %1596 = vmatprep.mubr.msk.f32.mxu1 %vm1735_vm3, %v1734_v11 }
 0x389   :  { %1590 = vmatprep.subr.mxu1 %v1734_v11 }
 0x38a   :  { %1591 = vmatpush3.msra.mxu1 %v1854_v14 }
 0x38b   :  { %1592 = vmatprep.subr.mxu1 %v1734_v11 }
 0x38c   :  { %1593 = vmatpush3.msra.mxu1 %v1864_v16 }
 0x38d   :  { %1594 = vmatprep.subr.mxu1 %v1734_v11 }
 0x38e   :  { %1595 = vmatpush3.msra.mxu1 %v1871_v17 }
 0x38f   :  { %1610 = vmatprep.subr.mxu1 %v1734_v11 }
 0x447   :  { %v522_v10 = vpop.f32.mrf.mxu1 }
 0x448   :  { %v526_v13 = vadd.f32 %v522_v10, %v294_v41 }
 0x449   :  { %v1576_v15 = vpop.f32.mrf.mxu1 }
 0x44a   :  { %v527_v18 = vmul.f32 0.5, %v526_v13 }
 0x44c   :  { %v528_v19 = vsel %vm1917_vm6, %v526_v13, %v527_v18 }
 0x44d   :  { %1674 = vtanh.f32 %v528_v19 }
 0x45a   :  { %v1675_v20 = vpop.eup %1674 }
 0x45b   :  { %v530_v21 = vmul.f32 0.5, %v1675_v20 }
 0x45d   :  { %v531_v22 = vadd.f32 0.5, %v530_v21 }
 0x45f   :  { %v532_v23 = vsel %vm1917_vm6, %v1675_v20, %v531_v22 }
 0x460   :  { %535 = vrot.lane.b32.xlu1 %v532_v23, %s1736_s6  ;;  %v533_v26 = vmul.f32 %v532_v23, %v441_v4 }
 0x4d2   :  { %v536_v24 = vpop.permute.xlu1 %535 }
 0x4d3   :  { %v538_v25 = vmul.f32 %v536_v24, %v532_v23 }
 0x4d5   :  { %540 = vrot.lane.b32.xlu0 %v538_v25, %s1737_s13 }
 0x547   :  { %v541_v27 = vpop.permute.xlu0 %540 }
 0x548   :  { %v543_v28 = vadd.f32 %v541_v27, %v533_v26 }
 0x54a   :  { %1676 = vtanh.f32 %v543_v28 }
 0x557   :  { %v1677_v29 = vpop.eup %1676 }
 0x558   :  { %546 = vrot.lane.b32.xlu1 %v1677_v29, %s1736_s6 }
 0x5ca   :  { %v547_v30 = vpop.permute.xlu1 %546 }
 0x5cb   :  { %v549_v31 = vmul.f32 %v547_v30, %v532_v23 }
 0x5cd   :  { %551 = vrot.lane.b32.xlu0 %v549_v31, %s1737_s13 }
 0x63f   :  { %v552_v32 = vpop.permute.xlu0 %551 }
 0x640   :  { %554 = vst.msk [vmem:[#allocation3 + $0x8] sm:$0xff] %vm197_vm2, %v552_v32  ;;  %1586 = vmatmul.mubr.msk.f32.vlgmr.msra.gmra.mxu0 %vm197_vm2, %v552_v32 }
 0x641   :  { %1600 = vmatpush3.msra.mxu0 %v1844_v12  ;;  %1607 = vmatprep.mubr.msk.f32.mxu0 %vm1735_vm3, %v1734_v11 }
 0x642   :  { %1601 = vmatprep.subr.mxu0 %v1734_v11 }
 0x643   :  { %1602 = vmatpush3.msra.mxu0 %v1854_v14 }
 0x644   :  { %1603 = vmatprep.subr.mxu0 %v1734_v11 }
 0x645   :  { %1604 = vmatpush3.msra.mxu0 %v1864_v16 }
 0x646   :  { %1605 = vmatprep.subr.mxu0 %v1734_v11 }
 0x647   :  { %1606 = vmatpush3.msra.mxu0 %v1871_v17 }
 0x648   :  { %1621 = vmatprep.subr.mxu0 %v1734_v11 }
 0x700   :  { %v624_v33 = vpop.f32.mrf.mxu0 }
 0x701   :  { %v628_v34 = vadd.f32 %v624_v33, %v1927_v52 }
 0x702   :  { %v1587_v35 = vpop.f32.mrf.mxu0 }
 0x703   :  { %v629_v36 = vmul.f32 0.5, %v628_v34 }
 0x705   :  { %v630_v37 = vsel %vm1917_vm6, %v628_v34, %v629_v36 }
 0x706   :  { %1678 = vtanh.f32 %v630_v37 }
 0x713   :  { %v1679_v39 = vpop.eup %1678 }
 0x714   :  { %v632_v40 = vmul.f32 0.5, %v1679_v39 }
 0x716   :  { %v633_v41 = vadd.f32 0.5, %v632_v40 }
 0x718   :  { %v634_v42 = vsel %vm1917_vm6, %v1679_v39, %v633_v41 }
 0x719   :  { %637 = vrot.lane.b32.xlu1 %v634_v42, %s1736_s6  ;;  %v635_v46 = vmul.f32 %v634_v42, %v543_v28 }
 0x78b   :  { %v638_v43 = vpop.permute.xlu1 %637 }
 0x78c   :  { %v640_v44 = vmul.f32 %v638_v43, %v634_v42 }
 0x78e   :  { %642 = vrot.lane.b32.xlu0 %v640_v44, %s1737_s13 }
 0x800   :  { %v643_v47 = vpop.permute.xlu0 %642 }
 0x801   :  { %v645_v48 = vadd.f32 %v643_v47, %v635_v46 }
 0x803   :  { %1680 = vtanh.f32 %v645_v48 }
 0x810   :  { %v1681_v50 = vpop.eup %1680 }
 0x811   :  { %648 = vrot.lane.b32.xlu1 %v1681_v50, %s1736_s6  ;;  %v1173_v50 = vld [vmem:[#allocation3] sm:$0xff] }
 0x883   :  { %v649_v51 = vpop.permute.xlu1 %648 }
 0x884   :  { %v651_v52 = vmul.f32 %v649_v51, %v634_v42  ;;  %v1184_v42 = vld [vmem:[%s2142_s7 + $0x18] sm:$0xff]  ;;  %v1182_v51 = vld [vmem:[%s2142_s7 + $0x8] sm:$0xff] }
 0x886   :  { %653 = vrot.lane.b32.xlu0 %v651_v52, %s1737_s13  ;;  %v1181_v52 = vld [vmem:[%s2142_s7] sm:$0xff] }
 0x8f8   :  { %v654_v53 = vpop.permute.xlu0 %653 }
 0x8f9   :  { %656 = vst.msk [vmem:[#allocation3 + $0x10] sm:$0xff] %vm197_vm2, %v654_v53  ;;  %1597 = vmatmul.mubr.msk.f32.vlgmr.msra.gmra.mxu1 %vm197_vm2, %v654_v53  ;;  %v1174_v53 = vld [vmem:[#allocation3 + $0x8] sm:$0xff] }
 0x8fa   :  { %1611 = vmatpush3.msra.mxu1 %v1844_v12  ;;  %1618 = vmatprep.mubr.msk.f32.mxu1 %vm1735_vm3, %v1734_v11 }
 0x8fb   :  { %1612 = vmatprep.subr.mxu1 %v1734_v11 }
 0x8fc   :  { %1613 = vmatpush3.msra.mxu1 %v1854_v14 }
 0x8fd   :  { %1614 = vmatprep.subr.mxu1 %v1734_v11 }
 0x8fe   :  { %1615 = vmatpush3.msra.mxu1 %v1864_v16 }
 0x8ff   :  { %1616 = vmatprep.subr.mxu1 %v1734_v11 }
 0x900   :  { %1617 = vmatpush3.msra.mxu1 %v1871_v17 }
 0x901   :  { %1632 = vmatprep.subr.mxu1 %v1734_v11 }
 0x9b9   :  { %v726_v54 = vpop.f32.mrf.mxu1 }
 0x9ba   :  { %v730_v56 = vadd.f32 %v726_v54, %v1924_v49  ;;  %v1175_v54 = vld [vmem:[#allocation3 + $0x10] sm:$0xff] }
 0x9bb   :  { %v1598_v57 = vpop.f32.mrf.mxu1 }
 0x9bc   :  { %v731_v59 = vmul.f32 0.5, %v730_v56 }
 0x9be   :  { %v732_v60 = vsel %vm1917_vm6, %v730_v56, %v731_v59 }
 0x9bf   :  { %1682 = vtanh.f32 %v732_v60  ;;  %v319_v60 = vadd.f32 %v1913_v38, %v1960_v9 }
 0x9cc   :  { %v1683_v62 = vpop.eup %1682 }
 0x9cd   :  { %v734_v63 = vmul.f32 0.5, %v1683_v62 }
 0x9cf   :  { %v735_v0 = vadd.f32 0.5, %v734_v63 }
 0x9d1   :  { %v736_v1 = vsel %vm1917_vm6, %v1683_v62, %v735_v0 }
 0x9d2   :  { %739 = vrot.lane.b32.xlu1 %v736_v1, %s1736_s6  ;;  %v737_v4 = vmul.f32 %v736_v1, %v645_v48  ;;  %v1183_v48 = vld [vmem:[%s2142_s7 + $0x10] sm:$0xff] }
 0xa44   :  { %v740_v2 = vpop.permute.xlu1 %739 }
 0xa45   :  { %v742_v3 = vmul.f32 %v740_v2, %v736_v1 }
 0xa47   :  { %744 = vrot.lane.b32.xlu0 %v742_v3, %s1737_s13 }
 0xab9   :  { %v745_v49 = vpop.permute.xlu0 %744 }
 0xaba   :  { %v747_v5 = vadd.f32 %v745_v49, %v737_v4 }
 0xabc   :  { %1684 = vtanh.f32 %v747_v5 }
 0xac9   :  { %v1685_v6 = vpop.eup %1684 }
 0xaca   :  { %750 = vrot.lane.b32.xlu1 %v1685_v6, %s1736_s6 }
 0xb3c   :  { %v751_v7 = vpop.permute.xlu1 %750 }
 0xb3d   :  { %v753_v8 = vmul.f32 %v751_v7, %v736_v1 }
 0xb3f   :  { %755 = vrot.lane.b32.xlu0 %v753_v8, %s1737_s13 }
 0xbb1   :  { %v756_v10 = vpop.permute.xlu0 %755 }
 0xbb2   :  { %758 = vst.msk [vmem:[#allocation3 + $0x18] sm:$0xff] %vm197_vm2, %v756_v10  ;;  %1608 = vmatmul.mubr.msk.f32.vlgmr.msra.gmra.mxu0 %vm197_vm2, %v756_v10 }
 0xbb3   :  { %1622 = vmatpush3.msra.mxu0 %v1844_v12  ;;  %1629 = vmatprep.mubr.msk.f32.mxu0 %vm1735_vm3, %v1734_v11 }
 0xbb4   :  { %1623 = vmatprep.subr.mxu0 %v1734_v11 }
 0xbb5   :  { %1624 = vmatpush3.msra.mxu0 %v1854_v14 }
 0xbb6   :  { %1625 = vmatprep.subr.mxu0 %v1734_v11 }
 0xbb7   :  { %1626 = vmatpush3.msra.mxu0 %v1864_v16 }
 0xbb8   :  { %1627 = vmatprep.subr.mxu0 %v1734_v11 }
 0xbb9   :  { %1628 = vmatpush3.msra.mxu0 %v1871_v17  ;;  %v1176_v56 = vld [vmem:[#allocation3 + $0x18] sm:$0xff] }
 0xbba   :  { %1643 = vmatprep.subr.mxu0 %v1184_v42 }
 0xc72   :  { %v828_v13 = vpop.f32.mrf.mxu0 }
 0xc73   :  { %v832_v15 = vadd.f32 %v828_v13, %v1933_v58 }
 0xc74   :  { %v1609_v18 = vpop.f32.mrf.mxu0 }
 0xc75   :  { %v833_v19 = vmul.f32 0.5, %v832_v15 }
 0xc77   :  { %v834_v20 = vsel %vm1917_vm6, %v832_v15, %v833_v19 }
 0xc78   :  { %1686 = vtanh.f32 %v834_v20 }
 0xc85   :  { %v1687_v21 = vpop.eup %1686 }
 0xc86   :  { %v836_v22 = vmul.f32 0.5, %v1687_v21 }
 0xc88   :  { %v837_v23 = vadd.f32 0.5, %v836_v22 }
 0xc8a   :  { %v838_v24 = vsel %vm1917_vm6, %v1687_v21, %v837_v23 }
 0xc8b   :  { %841 = vrot.lane.b32.xlu1 %v838_v24, %s1736_s6  ;;  %v839_v27 = vmul.f32 %v838_v24, %v747_v5 }
 0xcfd   :  { %v842_v25 = vpop.permute.xlu1 %841 }
 0xcfe   :  { %v844_v26 = vmul.f32 %v842_v25, %v838_v24 }
 0xd00   :  { %846 = vrot.lane.b32.xlu0 %v844_v26, %s1737_s13 }
 0xd72   :  { %v847_v58 = vpop.permute.xlu0 %846 }
 0xd73   :  { %v849_v28 = vadd.f32 %v847_v58, %v839_v27 }
 0xd75   :  { %1688 = vtanh.f32 %v849_v28 }
 0xd82   :  { %v1689_v29 = vpop.eup %1688 }
 0xd83   :  { %852 = vrot.lane.b32.xlu1 %v1689_v29, %s1736_s6 }
 0xdf5   :  { %v853_v30 = vpop.permute.xlu1 %852 }
 0xdf6   :  { %v855_v31 = vmul.f32 %v853_v30, %v838_v24 }
 0xdf8   :  { %857 = vrot.lane.b32.xlu0 %v855_v31, %s1737_s13 }
 0xe6a   :  { %v858_v32 = vpop.permute.xlu0 %857 }
 0xe6b   :  { %860 = vst.msk [vmem:[#allocation3 + $0x20] sm:$0xff] %vm197_vm2, %v858_v32  ;;  %1619 = vmatmul.mubr.msk.f32.vlgmr.msra.gmra.mxu1 %vm197_vm2, %v858_v32 }
 0xe6c   :  { %1633 = vmatpush3.msra.mxu1 %v1844_v12  ;;  %1640 = vmatprep.mubr.msk.f32.mxu1 %vm1735_vm3, %v1734_v11 }
 0xe6d   :  { %1634 = vmatprep.subr.mxu1 %v1734_v11 }
 0xe6e   :  { %1635 = vmatpush3.msra.mxu1 %v1854_v14 }
 0xe6f   :  { %1636 = vmatprep.subr.mxu1 %v1734_v11 }
 0xe70   :  { %1637 = vmatpush3.msra.mxu1 %v1864_v16 }
 0xe71   :  { %1638 = vmatprep.subr.mxu1 %v1734_v11 }
 0xe72   :  { %1639 = vmatpush3.msra.mxu1 %v1871_v17  ;;  %v1177_v57 = vld [vmem:[#allocation3 + $0x20] sm:$0xff] }
 0xf2b   :  { %v930_v33 = vpop.f32.mrf.mxu1 }
 0xf2c   :  { %v934_v34 = vadd.f32 %v930_v33, %v1930_v55 }
 0xf2d   :  { %v1620_v35 = vpop.f32.mrf.mxu1 }
 0xf2e   :  { %v935_v12 = vmul.f32 0.5, %v934_v34 }
 0xf30   :  { %v936_v36 = vsel %vm1917_vm6, %v934_v34, %v935_v12 }
 0xf31   :  { %1690 = vtanh.f32 %v936_v36 }
 0xf3e   :  { %v1691_v37 = vpop.eup %1690 }
 0xf3f   :  { %v938_v39 = vmul.f32 0.5, %v1691_v37 }
 0xf41   :  { %v939_v14 = vadd.f32 0.5, %v938_v39 }
 0xf43   :  { %v940_v40 = vsel %vm1917_vm6, %v1691_v37, %v939_v14 }
 0xf44   :  { %943 = vrot.lane.b32.xlu1 %v940_v40, %s1736_s6  ;;  %v941_v17 = vmul.f32 %v940_v40, %v849_v28 }
 0xfb6   :  { %v944_v11 = vpop.permute.xlu1 %943 }
 0xfb7   :  { %v946_v16 = vmul.f32 %v944_v11, %v940_v40 }
 0xfb9   :  { %948 = vrot.lane.b32.xlu0 %v946_v16, %s1737_s13 }
0x102b   :  { %v949_v55 = vpop.permute.xlu0 %948 }
0x102c   :  { %v951_v41 = vadd.f32 %v949_v55, %v941_v17 }
0x102e   :  { %1692 = vtanh.f32 %v951_v41 }
0x103b   :  { %v1693_v43 = vpop.eup %1692 }
0x103c   :  { %954 = vrot.lane.b32.xlu1 %v1693_v43, %s1736_s6 }
0x10ae   :  { %v955_v44 = vpop.permute.xlu1 %954 }
0x10af   :  { %v957_v46 = vmul.f32 %v955_v44, %v940_v40 }
0x10b1   :  { %959 = vrot.lane.b32.xlu0 %v957_v46, %s1737_s13 }
0x1123   :  { %v960_v47 = vpop.permute.xlu0 %959 }
0x1124   :  { %962 = vst.msk [vmem:[#allocation3 + $0x28] sm:$0xff] %vm197_vm2, %v960_v47  ;;  %1630 = vmatmul.mubr.msk.f32.vlgmr.msra.gmra.mxu0 %vm197_vm2, %v960_v47 }
0x1125   :  { %1644 = vmatpush3.msra.mxu0 %v1184_v42  ;;  %1651 = vmatprep.mubr.msk.f32.mxu0 %vm197_vm2, %v1173_v50 }
0x1126   :  { %1645 = vmatprep.subr.mxu0 %v1183_v48 }
0x1127   :  { %1646 = vmatpush3.msra.mxu0 %v1183_v48 }
0x1128   :  { %1647 = vmatprep.subr.mxu0 %v1182_v51 }
0x1129   :  { %1648 = vmatpush3.msra.mxu0 %v1182_v51 }
0x112a   :  { %1649 = vmatprep.subr.mxu0 %v1181_v52 }
0x112b   :  { %1650 = vmatpush3.msra.mxu0 %v1181_v52  ;;  %v1178_v59 = vld [vmem:[#allocation3 + $0x28] sm:$0xff] }
0x112c   :  { %1652 = vmatmul.mubr.msk.f32.vlgmr.msra.gmra.mxu0 %vm197_vm2, %v1174_v53 }
0x112d   :  { %1654 = vmatprep.mubr.msk.f32.mxu0 %vm197_vm2, %v1175_v54 }
0x1130   :  { %1655 = vmatmul.mubr.msk.f32.gmra.mxu0 %vm197_vm2, %v1176_v56 }
0x1131   :  { %1657 = vmatprep.mubr.msk.f32.mxu0 %vm197_vm2, %v1177_v57 }
0x1134   :  { %1658 = vmatmul.mubr.msk.f32.gmra.mxu0 %vm197_vm2, %v1178_v59 }
0x11e4   :  { %v1032_v62 = vpop.f32.mrf.mxu0 }
0x11e5   :  { %v1036_v63 = vadd.f32 %v1032_v62, %v319_v60 }
0x11e6   :  { %v1631_v0 = vpop.f32.mrf.mxu0 }
0x11e7   :  { %v1037_v1 = vmul.f32 0.5, %v1036_v63 }
0x11e9   :  { %v1038_v2 = vsel %vm1917_vm6, %v1036_v63, %v1037_v1 }
0x11ea   :  { %1694 = vtanh.f32 %v1038_v2 }
0x11ec   :  { %v1653_v33 = vpop.f32.mrf.mxu0 }
0x11ed   :  { %v1288_v16 = vadd.f32 %v1653_v33, %v1439_v45 }
0x11ee   :  { %v1282_v34 = vpop.f32.mrf.mxu0 }
0x11ef   :  { %v1283_v12 = vadd.f32 %v1439_v45, %v1282_v34 }
0x11f0   :  { %v1656_v35 = vpop.f32.mrf.mxu0 }
0x11f1   :  { %v1298_v37 = vadd.f32 %v1656_v35, %v1439_v45 }
0x11f2   :  { %v1292_v36 = vpop.f32.mrf.mxu0 }
0x11f3   :  { %v1293_v17 = vadd.f32 %v1439_v45, %v1292_v36 }
0x11f4   :  { %v1659_v39 = vpop.f32.mrf.mxu0 }
0x11f5   :  { %v1308_v14 = vadd.f32 %v1659_v39, %v1439_v45 }
0x11f6   :  { %v1302_v55 = vpop.f32.mrf.mxu0 }
0x11f7   :  { %v1695_v3 = vpop.eup %1694 }
0x11f8   :  { %v1040_v4 = vmul.f32 0.5, %v1695_v3 }
0x11fa   :  { %v1041_v49 = vadd.f32 0.5, %v1040_v4 }
0x11fc   :  { %v1042_v5 = vsel %vm1917_vm6, %v1695_v3, %v1041_v49 }
0x11fd   :  { %1045 = vrot.lane.b32.xlu1 %v1042_v5, %s1736_s6  ;;  %v1043_v38 = vmul.f32 %v1042_v5, %v951_v41  ;;  %v1303_v41 = vadd.f32 %v1439_v45, %v1302_v55 }
0x126f   :  { %v1046_v6 = vpop.permute.xlu1 %1045 }
0x1270   :  { %v1048_v7 = vmul.f32 %v1046_v6, %v1042_v5 }
0x1272   :  { %1050 = vrot.lane.b32.xlu0 %v1048_v7, %s1737_s13 }
0x12e4   :  { %v1051_v9 = vpop.permute.xlu0 %1050 }
0x12e5   :  { %v1053_v8 = vadd.f32 %v1051_v9, %v1043_v38 }
0x12e7   :  { %1696 = vtanh.f32 %v1053_v8 }
0x12f4   :  { %v1697_v10 = vpop.eup %1696 }
0x12f5   :  { %1056 = vrot.lane.b32.xlu1 %v1697_v10, %s1736_s6 }
0x1367   :  { %v1057_v13 = vpop.permute.xlu1 %1056 }
0x1368   :  { %v1059_v15 = vmul.f32 %v1057_v13, %v1042_v5 }
0x136a   :  { %1061 = vrot.lane.b32.xlu0 %v1059_v15, %s1737_s13 }
0x13dc   :  { %v1062_v18 = vpop.permute.xlu0 %1061 }
0x13dd   :  { %1064 = vst.msk [vmem:[#allocation3 + $0x30] sm:$0xff] %vm197_vm2, %v1062_v18  ;;  %1641 = vmatmul.mubr.msk.f32.vlgmr.msra.gmra.mxu1 %vm197_vm2, %v1062_v18 }
0x13e4   :  { %v1179_v19 = vld [vmem:[#allocation3 + $0x30] sm:$0xff] }
0x13e5   :  { %1660 = vmatprep.mubr.msk.f32.mxu0 %vm197_vm2, %v1179_v19 }
0x149d   :  { %v1134_v20 = vpop.f32.mrf.mxu1 }
0x149e   :  { %v1138_v21 = vadd.f32 %v1134_v20, %v1939_v61 }
0x149f   :  { %v1642_v22 = vpop.f32.mrf.mxu1 }
0x14a0   :  { %v1139_v23 = vmul.f32 0.5, %v1138_v21 }
0x14a2   :  { %v1140_v24 = vsel %vm1917_vm6, %v1138_v21, %v1139_v23 }
0x14a3   :  { %1698 = vtanh.f32 %v1140_v24 }
0x14b0   :  { %v1699_v25 = vpop.eup %1698 }
0x14b1   :  { %v1142_v26 = vmul.f32 0.5, %v1699_v25 }
0x14b3   :  { %v1143_v27 = vadd.f32 0.5, %v1142_v26 }
0x14b5   :  { %v1144_v58 = vsel %vm1917_vm6, %v1699_v25, %v1143_v27 }
0x14b6   :  { %1147 = vrot.lane.b32.xlu1 %v1144_v58, %s1736_s6  ;;  %v1145_v30 = vmul.f32 %v1144_v58, %v1053_v8 }
0x1528   :  { %v1148_v28 = vpop.permute.xlu1 %1147 }
0x1529   :  { %v1150_v29 = vmul.f32 %v1148_v28, %v1144_v58 }
0x152b   :  { %1152 = vrot.lane.b32.xlu0 %v1150_v29, %s1737_s13 }
0x159d   :  { %v1153_v61 = vpop.permute.xlu0 %1152 }
0x159e   :  { %v2092_v31 = vadd.f32 %v1153_v61, %v1145_v30 }
0x15a0   :  { %1700 = vtanh.f32 %v2092_v31 }
0x15ad   :  { %v1701_v32 = vpop.eup %1700 }
0x15ae   :  { %1158 = vrot.lane.b32.xlu1 %v1701_v32, %s1736_s6 }
0x15d2   :  { %1321 = vmax.xlane.f32.xlu1 %v1283_v12 }
0x15d6   :  { %1327 = vmax.xlane.f32.xlu1 %v1298_v37 }
0x15da   :  { %1331 = vmax.xlane.f32.xlu1 %v1308_v14 }
0x1620   :  { %v1159_v40 = vpop.permute.xlu1 %1158 }
0x1621   :  { %v1161_v11 = vmul.f32 %v1159_v40, %v1144_v58 }
0x1623   :  { %1163 = vrot.lane.b32.xlu0 %v1161_v11, %s1737_s13 }
0x1642   :  { %1323 = vmax.xlane.f32.xlu0 %v1288_v16 }
0x1646   :  { %1325 = vmax.xlane.f32.xlu0 %v1293_v17 }
0x164a   :  { %1329 = vmax.xlane.f32.xlu0 %v1303_v41 }
0x165b   :  { %v1322_v44 = vpop.xlane.xlu1 %1321 }
0x165c   :  { %v1337_v51 = vsub.f32 %v1283_v12, %v1322_v44 }
0x165e   :  { %v1345_v56 = vmul.f32 1.442695, %v1337_v51 }
0x165f   :  { %v1328_v47 = vpop.xlane.xlu1 %1327 }
0x1660   :  { %v1340_v52 = vsub.f32 %v1298_v37, %v1328_v47 }
0x1662   :  { %v1351_v60 = vmul.f32 1.442695, %v1340_v52 }
0x1663   :  { %v1332_v54 = vpop.xlane.xlu1 %1331 }
0x1664   :  { %v1342_v62 = vsub.f32 %v1308_v14, %v1332_v54 }
0x1666   :  { %v1355_v1 = vmul.f32 1.442695, %v1342_v62 }
0x1695   :  { %v1164_v42 = vpop.permute.xlu0 %1163 }
0x1696   :  { %1166 = vst.msk [vmem:[#allocation3 + $0x38] sm:$0xff] %vm197_vm2, %v1164_v42  ;;  %1167 = vst.msk [vmem:[%s2144_s10] sm:$0xff] %vm197_vm2, %v1164_v42 }
0x169d   :  { %v1180_v43 = vld [vmem:[#allocation3 + $0x38] sm:$0xff] }
0x169e   :  { %1661 = vmatmul.mubr.msk.f32.gmra.mxu0 %vm197_vm2, %v1180_v43 }
0x16cb   :  { %v1324_v46 = vpop.xlane.xlu0 %1323 }
0x16cc   :  { %v1338_v48 = vsub.f32 %v1288_v16, %v1324_v46 }
0x16ce   :  { %v1347_v53 = vmul.f32 1.442695, %v1338_v48 }
0x16cf   :  { %v1326_v50 = vpop.xlane.xlu0 %1325 }
0x16d0   :  { %v1339_v57 = vsub.f32 %v1293_v17, %v1326_v50  ;;  %1702 = vpow2.f32 %v1347_v53 }
0x16d1   :  { %1704 = vpow2.f32 %v1345_v56 }
0x16d2   :  { %v1349_v63 = vmul.f32 1.442695, %v1339_v57  ;;  %1706 = vpow2.f32 %v1351_v60 }
0x16d3   :  { %v1330_v59 = vpop.xlane.xlu0 %1329 }
0x16d4   :  { %v1341_v0 = vsub.f32 %v1303_v41, %v1330_v59  ;;  %1708 = vpow2.f32 %v1349_v63 }
0x16d5   :  { %1710 = vpow2.f32 %v1355_v1 }
0x16d6   :  { %v1353_v2 = vmul.f32 1.442695, %v1341_v0 }
0x16d8   :  { %1712 = vpow2.f32 %v1353_v2 }
0x16dd   :  { %v1703_v6 = vpop.eup %1702 }
0x16de   :  { %v1705_v7 = vpop.eup %1704 }
0x16df   :  { %v1707_v38 = vpop.eup %1706 }
0x16e1   :  { %v1709_v9 = vpop.eup %1708 }
0x16e2   :  { %v1711_v8 = vpop.eup %1710 }
0x16e5   :  { %v1713_v10 = vpop.eup %1712 }
0x175e   :  { %v1662_v3 = vpop.f32.mrf.mxu0 }
0x175f   :  { %v1318_v4 = vadd.f32 %v1662_v3, %v1439_v45 }
0x1760   :  { %v1312_v49 = vpop.f32.mrf.mxu0 }
0x1761   :  { %v1313_v5 = vadd.f32 %v1439_v45, %v1312_v49  ;;  %1335 = vmax.xlane.f32.xlu1 %v1318_v4 }
0x1763   :  { %1333 = vmax.xlane.f32.xlu0 %v1313_v5 }
0x1765   :  { %1363 = vadd.xlane.f32.xlu1 %v1703_v6 }
0x1767   :  { %1361 = vadd.xlane.f32.xlu0 %v1705_v7 }
0x1769   :  { %1367 = vadd.xlane.f32.xlu1 %v1707_v38 }
0x176b   :  { %1365 = vadd.xlane.f32.xlu0 %v1709_v9 }
0x176d   :  { %1371 = vadd.xlane.f32.xlu1 %v1711_v8 }
0x176f   :  { %1369 = vadd.xlane.f32.xlu0 %v1713_v10 }
0x17ea   :  { %v1336_v13 = vpop.xlane.xlu1 %1335 }
0x17eb   :  { %v1344_v15 = vsub.f32 %v1318_v4, %v1336_v13 }
0x17ec   :  { %v1334_v18 = vpop.xlane.xlu0 %1333 }
0x17ed   :  { %v1359_v19 = vmul.f32 1.442695, %v1344_v15  ;;  %v1343_v20 = vsub.f32 %v1313_v5, %v1334_v18 }
0x17ee   :  { %v1364_v21 = vpop.xlane.xlu1 %1363 }
0x17ef   :  { %1714 = vpow2.f32 %v1359_v19  ;;  %v1357_v22 = vmul.f32 1.442695, %v1343_v20 }
0x17f0   :  { %1716 = vrcp.f32 %v1364_v21  ;;  %v1362_v23 = vpop.xlane.xlu0 %1361 }
0x17f1   :  { %1718 = vpow2.f32 %v1357_v22 }
0x17f2   :  { %1720 = vrcp.f32 %v1362_v23  ;;  %v1368_v24 = vpop.xlane.xlu1 %1367 }
0x17f3   :  { %1722 = vrcp.f32 %v1368_v24 }
0x17f4   :  { %v1366_v25 = vpop.xlane.xlu0 %1365 }
0x17f5   :  { %1724 = vrcp.f32 %v1366_v25 }
0x17f6   :  { %v1372_v26 = vpop.xlane.xlu1 %1371 }
0x17f7   :  { %1726 = vrcp.f32 %v1372_v26 }
0x17f8   :  { %v1370_v27 = vpop.xlane.xlu0 %1369 }
0x17f9   :  { %1728 = vrcp.f32 %v1370_v27 }
0x17fc   :  { %v1715_v58 = vpop.eup %1714 }
0x17fd   :  { %v1717_v28 = vpop.eup %1716  ;;  %1375 = vadd.xlane.f32.xlu1 %v1715_v58 }
0x17fe   :  { %v1719_v29 = vpop.eup %1718  ;;  %v1380_v30 = vmul.f32 %v1717_v28, %v1703_v6 }
0x17ff   :  { %v1721_v61 = vpop.eup %1720  ;;  %1373 = vadd.xlane.f32.xlu0 %v1719_v29 }
0x1800   :  { %v1723_v32 = vpop.eup %1722  ;;  %1394 = vst [vmem:[%s2145_s9 + $0x8] sm:$0xff] %v1380_v30  ;;  %v1378_v33 = vmul.f32 %v1721_v61, %v1705_v7 }
0x1801   :  { %v1384_v34 = vmul.f32 %v1723_v32, %v1707_v38 }
0x1802   :  { %v1725_v35 = vpop.eup %1724  ;;  %1393 = vst [vmem:[%s2145_s9] sm:$0xff] %v1378_v33 }
0x1803   :  { %1396 = vst [vmem:[%s2145_s9 + $0x18] sm:$0xff] %v1384_v34  ;;  %v1382_v45 = vmul.f32 %v1725_v35, %v1709_v9 }
0x1804   :  { %v1727_v12 = vpop.eup %1726 }
0x1805   :  { %1395 = vst [vmem:[%s2145_s9 + $0x10] sm:$0xff] %v1382_v45  ;;  %v1388_v36 = vmul.f32 %v1727_v12, %v1711_v8 }
0x1806   :  { %v1729_v37 = vpop.eup %1728 }
0x1807   :  { %1398 = vst [vmem:[%s2145_s9 + $0x28] sm:$0xff] %v1388_v36  ;;  %v1386_v39 = vmul.f32 %v1729_v37, %v1713_v10 }
0x1809   :  { %1397 = vst [vmem:[%s2145_s9 + $0x20] sm:$0xff] %v1386_v39 }
0x1815   :  { %1169 = vrot.lane.b32.xlu0 %v2092_v31, %s1738_s5 }
0x1886   :  { %v1376_v14 = vpop.xlane.xlu1 %1375 }
0x1887   :  { %1730 = vrcp.f32 %v1376_v14 }
0x1888   :  { %v1374_v40 = vpop.xlane.xlu0 %1373 }
0x1889   :  { %1732 = vrcp.f32 %v1374_v40 }
0x188c   :  { %v1170_v11 = vpop.permute.xlu0 %1169 }
0x188d   :  { %1172 = vst.msk [vmem:[%s2146_s11] sm:$0xff] %vm197_vm2, %v1170_v11 }
0x1894   :  { %v1731_v16 = vpop.eup %1730 }
0x1895   :  { %v1392_v17 = vmul.f32 %v1731_v16, %v1715_v58 }
0x1896   :  { %v1733_v55 = vpop.eup %1732 }
0x1897   :  { %1400 = vst [vmem:[%s2145_s9 + $0x38] sm:$0xff] %v1392_v17  ;;  %v1390_v41 = vmul.f32 %v1733_v55, %v1719_v29 }
0x1899   :  { %1399 = vst [vmem:[%s2145_s9 + $0x30] sm:$0xff] %v1390_v41 }

</bundles_post_ra>
